<compile_context>
chip_gen: v7x
topology: tpu7x:2x2x1
jax: 0.10.0
libtpu: 0.0.40
codegen_flags: <defaults>
</compile_context>

<pallas_src>
import functools
import math
from typing import NamedTuple, Optional, Sequence, Tuple

import jax
import jax.numpy as jnp
from jax.experimental import pallas as pl
from jax.experimental.pallas import tpu as pltpu


# ----------------------------------------------------------------------------
# Kernel
# ----------------------------------------------------------------------------
def _mi_kernel(x0_ref, x1_ref, w_ref, p_ref, out_ref, *, in0):
    # Two MXU matmuls with f32 accumulation; w1/w2 sliced from the resident
    # weight tile (in0 is sublane-pack aligned -> free sublane-boundary slice).
    wx1 = jnp.dot(x0_ref[...], w_ref[:in0, :], preferred_element_type=jnp.float32)
    wx2 = jnp.dot(x1_ref[...], w_ref[in0:, :], preferred_element_type=jnp.float32)

    p = p_ref[...]                        # (4, tn) f32: [alpha, beta1, beta2, bias]
    alpha = p[0:1, :]
    b1 = p[1:2, :]
    b2 = p[2:3, :]
    bias = p[3:4, :]

    # alpha*wx1*wx2 + b1*wx1 + b2*wx2 + bias, factored -> 3 VPU multiplies.
    res = wx1 * (alpha * wx2 + b1) + (b2 * wx2 + bias)
    out_ref[...] = res.astype(out_ref.dtype)


# ----------------------------------------------------------------------------
# One-time parameter preparation (hoisted out of the hot path)
# ----------------------------------------------------------------------------
class PreparedMI(NamedTuple):
    weights: jax.Array      # (total_in_padded, N) in compute dtype, split aligned
    params: jax.Array       # (4, N) f32: [alpha, beta1, beta2, bias]
    in0_padded: int         # aligned w1/w2 split row
    pad0: int               # zero rows inserted at the split boundary
    inputs_sizes: Tuple[int, int]
    N: int


def prepare_mi_params(weights, alphas, betas, biases,
                      inputs_sizes: Sequence[int], output_sizes: Sequence[int],
                      compute_dtype=jnp.bfloat16) -> PreparedMI:
    """Cast/re-pad parameters once. Call outside the per-step hot path."""
    total_in = sum(inputs_sizes)
    N = sum(output_sizes)
    assert weights.shape == (total_in, N)
    assert alphas.shape == (N,)
    assert betas.shape == (2 * N,), "betas must have length 2 * sum(output_sizes)"
    if biases is not None:
        assert biases.shape == (N,)

    in0 = inputs_sizes[0]
    itemsize = jnp.dtype(compute_dtype).itemsize
    sublane_pack = max(8, 32 // itemsize)      # f32: 8, bf16: 16, int8: 32

    # Keep the w1/w2 split on a packed-sublane boundary so the in-kernel slice
    # of the resident weight tile is free (zero K-rows don't change the matmul).
    pad0 = (-in0) % sublane_pack
    w = weights
    if pad0:
        w = jnp.concatenate(
            [w[:in0], jnp.zeros((pad0, N), w.dtype), w[in0:]], axis=0)
    w = w.astype(compute_dtype)

    bias_vec = biases if biases is not None else jnp.zeros((N,), weights.dtype)
    params = jnp.stack([alphas, betas[:N], betas[N:], bias_vec]).astype(jnp.float32)

    return PreparedMI(weights=w, params=params, in0_padded=in0 + pad0, pad0=pad0,
                      inputs_sizes=(inputs_sizes[0], inputs_sizes[1]), N=N)


# ----------------------------------------------------------------------------
# Forward (hot path)
# ----------------------------------------------------------------------------
def _vmem_footprint(tm, tn, total_in, K0, K1, w_itm, a_itm, out_itm):
    return (2 * total_in * tn * w_itm       # double-buffered weight tile
            + 2 * tm * (K0 + K1) * a_itm    # double-buffered activations
            + 2 * 4 * tn * 4                # double-buffered packed params
            + 2 * tm * tn * out_itm         # double-buffered output tile
            + 3 * tm * tn * 4)              # f32 intermediates wx1/wx2/res


def _select_tiles(B, N, total_in, K0, K1, w_itm, a_itm, out_itm, vmem_cap):
    budget = int(0.6 * vmem_cap)
    if B <= 512:
        tm_cands = [B]                      # activations fully VMEM-resident
    else:
        tm_cands = [c for c in (512, 256, 128, 64, 32, 16, 8) if B % c == 0] or [B]
    tn_cands = [c for c in (1024, 512, 256, 128) if N % c == 0] or [N]

    for tm in tm_cands:
        for tn in tn_cands:
            if _vmem_footprint(tm, tn, total_in, K0, K1,
                               w_itm, a_itm, out_itm) <= budget:
                return tm, tn
    return tm_cands[-1], tn_cands[-1]


def multiplicative_integration(prep: PreparedMI, input0, input1, *,
                               tm: Optional[int] = None,
                               tn: Optional[int] = None,
                               out_dtype=None):
    """Pallas-backed forward matching the PyTorch module semantics."""
    B = input0.shape[0]
    N = prep.N
    assert input0.shape[1] == prep.inputs_sizes[0]
    assert input1.shape[1] == prep.inputs_sizes[1]
    assert input1.shape[0] == B

    cdt = prep.weights.dtype
    if prep.pad0:
        # TODO(synk): if the split is unaligned, this small activation pad runs
        # per call; choose inputs_sizes[0] % 16 == 0 to avoid it entirely.
        input0 = jnp.pad(input0, ((0, 0), (0, prep.pad0)))
    x0 = input0.astype(cdt)
    x1 = input1.astype(cdt)

    K0 = prep.in0_padded
    K1 = x1.shape[1]
    total_in = prep.weights.shape[0]
    out_dtype = out_dtype or input0.dtype

    w_itm = jnp.dtype(cdt).itemsize
    a_itm = jnp.dtype(cdt).itemsize
    out_itm = jnp.dtype(out_dtype).itemsize

    try:
        vmem_cap = int(pltpu.get_tpu_info().vmem_capacity_bytes)
    except Exception:
        vmem_cap = 64 * 2**20               # conservative (v7x-sized) fallback

    if tm is None or tn is None:
        auto_tm, auto_tn = _select_tiles(B, N, total_in, K0, K1,
                                         w_itm, a_itm, out_itm, vmem_cap)
        tm = tm or auto_tm
        tn = tn or auto_tn
    assert B % tm == 0 and N % tn == 0

    # N outer / B inner: weight & param block indices are constant across the
    # inner batch steps, so each weight tile is streamed from HBM exactly once.
    grid = (N // tn, B // tm)
    n_n, n_b = grid

    kernel = functools.partial(_mi_kernel, in0=K0)

    # Advisory cost for XLA scheduling; activations re-read once per N tile
    # unless fully resident (single batch block).
    act_reads = 1 if n_b == 1 else n_n
    flops = 2 * B * (K0 + K1) * N + 4 * B * N
    bytes_accessed = int(prep.weights.size * w_itm
                         + prep.params.size * 4
                         + act_reads * B * (K0 + K1) * a_itm
                         + B * N * out_itm)

    footprint = _vmem_footprint(tm, tn, total_in, K0, K1, w_itm, a_itm, out_itm)
    vmem_limit = int(min(0.75 * vmem_cap,
                         max(32 * 2**20, footprint + (2 << 20))))

    out = pl.pallas_call(
        kernel,
        out_shape=jax.ShapeDtypeStruct((B, N), out_dtype),
        grid_spec=pltpu.PrefetchScalarGridSpec(
            num_scalar_prefetch=0,
            grid=grid,
            in_specs=[
                pl.BlockSpec((tm, K0), lambda n, b: (b, 0)),        # input0
                pl.BlockSpec((tm, K1), lambda n, b: (b, 0)),        # input1
                pl.BlockSpec((total_in, tn), lambda n, b: (0, n)),  # weights (full K)
                pl.BlockSpec((4, tn), lambda n, b: (0, n)),         # packed params
            ],
            out_specs=pl.BlockSpec((tm, tn), lambda n, b: (b, n)),
        ),
        compiler_params=pltpu.CompilerParams(
            # N axis parallel, B axis arbitrary: a megacore split (v7x) lands on
            # N so each TensorCore streams only its share of the weight bytes.
            dimension_semantics=("parallel", "arbitrary"),
            vmem_limit_bytes=vmem_limit),
        cost_estimate=pl.CostEstimate(
            flops=flops, transcendentals=0, bytes_accessed=bytes_accessed),
    )(x0, x1, prep.weights, prep.params)
    return out


# ----------------------------------------------------------------------------
# Init mirroring reset_parameters()
# ----------------------------------------------------------------------------
def init_params(key, inputs_sizes, output_sizes, bias=True,
                bias_start=0.0, alpha_start=1.0, beta_start=1.0,
                dtype=jnp.float32):
    total_in = sum(inputs_sizes)
    total_out = sum(output_sizes)
    limit = math.sqrt(6.0 / (total_in + total_out))   # xavier_uniform_, gain=1
    weights = jax.random.uniform(key, (total_in, total_out), dtype=dtype,
                                 minval=-limit, maxval=limit)
    alphas = jnp.full((total_out,), alpha_start, dtype=dtype)
    betas = jnp.full((2 * total_out,), beta_start, dtype=dtype)
    biases = jnp.full((total_out,), bias_start, dtype=dtype) if bias else None
    return weights, alphas, betas, biases


if __name__ == "__main__":
    # RNN-gate-like shapes: x_t (64), h_{t-1} (128), two stacked 256-wide
    # outputs -> N = 512 (lane-dense output tiles). B=32 so explicit tm=16,
    # tn=256 exercises both grid axes and every index map.
    inputs_sizes = [64, 128]
    output_sizes = [256, 256]
    B = 32

    key = jax.random.PRNGKey(0)
    k_w, k_x0, k_x1 = jax.random.split(key, 3)

    weights, alphas, betas, biases = init_params(
        k_w, inputs_sizes, output_sizes, bias=True,
        bias_start=0.0, alpha_start=1.0, beta_start=1.0)

    input0 = jax.random.normal(k_x0, (B, inputs_sizes[0]), dtype=jnp.float32)
    input1 = jax.random.normal(k_x1, (B, inputs_sizes[1]), dtype=jnp.float32)

    # One-time parameter prep (bf16 weights, packed param buffer) — hoisted.
    prep = prepare_mi_params(weights, alphas, betas, biases,
                             inputs_sizes, output_sizes,
                             compute_dtype=jnp.bfloat16)

    out = multiplicative_integration(prep, input0, input1, tm=16, tn=256)
    out = jax.block_until_ready(out)

    # Reference check (pure JAX, same bf16 inputs / f32 accumulation).
    N = sum(output_sizes)
    in0 = inputs_sizes[0]
    w1b = weights[:in0].astype(jnp.bfloat16)
    w2b = weights[in0:].astype(jnp.bfloat16)
    wx1 = jnp.dot(input0.astype(jnp.bfloat16), w1b,
                  preferred_element_type=jnp.float32)
    wx2 = jnp.dot(input1.astype(jnp.bfloat16), w2b,
                  preferred_element_type=jnp.float32)
    ref = alphas * wx1 * wx2 + betas[:N] * wx1 + betas[N:] * wx2 + biases

    assert out.shape == (B, N)
    assert out.dtype == jnp.float32
    max_err = float(jnp.max(jnp.abs(out - ref)))
    assert jnp.allclose(out, ref, atol=5e-2, rtol=1e-2), max_err

    print("KERNEL_OK")
</pallas_src>

<mosaic_0001>
module attributes {stable_mosaic.version = 11 : i64} {
  func.func @_mi_kernel(%arg0: i32, %arg1: i32, %arg2: memref<16x64xbf16, #tpu.memory_space<vmem>>, %arg3: memref<16x128xbf16, #tpu.memory_space<vmem>>, %arg4: memref<192x256xbf16, #tpu.memory_space<vmem>>, %arg5: memref<4x256xf32, #tpu.memory_space<vmem>>, %arg6: memref<16x256xf32, #tpu.memory_space<vmem>>) attributes {dimension_semantics = [#tpu.dimension_semantics<parallel>, #tpu.dimension_semantics<arbitrary>], iteration_bounds = array<i64: 2, 2>, scalar_prefetch = 0 : i64, scratch_operands = 0 : i64, tpu.core_type = #tpu.core_type<tc>, window_params = [{transform_indices = @transform_0, window_bounds = array<i64: 16, 64>}, {transform_indices = @transform_1, window_bounds = array<i64: 16, 128>}, {transform_indices = @transform_2, window_bounds = array<i64: 192, 256>}, {transform_indices = @transform_3, window_bounds = array<i64: 4, 256>}, {transform_indices = @transform_4, window_bounds = array<i64: 16, 256>}]} {
    %c0 = arith.constant 0 : index
    %c0_0 = arith.constant 0 : index
    %0 = vector.load %arg2[%c0, %c0_0] : memref<16x64xbf16, #tpu.memory_space<vmem>>, vector<16x64xbf16>
    %c0_1 = arith.constant 0 : index
    %c0_2 = arith.constant 0 : index
    %1 = vector.load %arg4[%c0_1, %c0_2] : memref<192x256xbf16, #tpu.memory_space<vmem>>, vector<64x256xbf16>
    %cst = arith.constant dense<0.000000e+00> : vector<16x256xf32>
    %2 = tpu.matmul %0, %1, %cst {dimension_numbers = #tpu.dot_dimension_numbers<[1], [0], [0], [1], [0, 0, 1, 1], [], []>} : vector<16x64xbf16>, vector<64x256xbf16>, vector<16x256xf32> -> vector<16x256xf32>
    %c0_3 = arith.constant 0 : index
    %c0_4 = arith.constant 0 : index
    %3 = vector.load %arg3[%c0_3, %c0_4] : memref<16x128xbf16, #tpu.memory_space<vmem>>, vector<16x128xbf16>
    %c64 = arith.constant 64 : index
    %c0_5 = arith.constant 0 : index
    %4 = vector.load %arg4[%c64, %c0_5] : memref<192x256xbf16, #tpu.memory_space<vmem>>, vector<128x256xbf16>
    %cst_6 = arith.constant dense<0.000000e+00> : vector<16x256xf32>
    %5 = tpu.matmul %3, %4, %cst_6 {dimension_numbers = #tpu.dot_dimension_numbers<[1], [0], [0], [1], [0, 0, 1, 1], [], []>} : vector<16x128xbf16>, vector<128x256xbf16>, vector<16x256xf32> -> vector<16x256xf32>
    %c0_7 = arith.constant 0 : index
    %c0_8 = arith.constant 0 : index
    %6 = vector.load %arg5[%c0_7, %c0_8] : memref<4x256xf32, #tpu.memory_space<vmem>>, vector<4x256xf32>
    %7 = vector.extract_strided_slice %6 {offsets = [0, 0], sizes = [1, 256], strides = [1, 1]} : vector<4x256xf32> to vector<1x256xf32>
    %8 = vector.extract_strided_slice %6 {offsets = [1, 0], sizes = [1, 256], strides = [1, 1]} : vector<4x256xf32> to vector<1x256xf32>
    %9 = vector.extract_strided_slice %6 {offsets = [2, 0], sizes = [1, 256], strides = [1, 1]} : vector<4x256xf32> to vector<1x256xf32>
    %10 = vector.extract_strided_slice %6 {offsets = [3, 0], sizes = [1, 256], strides = [1, 1]} : vector<4x256xf32> to vector<1x256xf32>
    %11 = vector.broadcast %7 : vector<1x256xf32> to vector<16x256xf32>
    %12 = arith.mulf %11, %5 : vector<16x256xf32>
    %13 = vector.broadcast %8 : vector<1x256xf32> to vector<16x256xf32>
    %14 = arith.addf %12, %13 : vector<16x256xf32>
    %15 = arith.mulf %2, %14 : vector<16x256xf32>
    %16 = vector.broadcast %9 : vector<1x256xf32> to vector<16x256xf32>
    %17 = arith.mulf %16, %5 : vector<16x256xf32>
    %18 = vector.broadcast %10 : vector<1x256xf32> to vector<16x256xf32>
    %19 = arith.addf %17, %18 : vector<16x256xf32>
    %20 = arith.addf %15, %19 : vector<16x256xf32>
    %c0_9 = arith.constant 0 : index
    %c0_10 = arith.constant 0 : index
    %21 = vector.load %arg6[%c0_9, %c0_10] : memref<16x256xf32, #tpu.memory_space<vmem>>, vector<16x256xf32>
    tpu.vector_store %arg6[%c0_9, %c0_10], %20 {strides = array<i32>} : memref<16x256xf32, #tpu.memory_space<vmem>>, vector<16x256xf32>,
    return
  }
  func.func @transform_0(%arg0: i32, %arg1: i32) -> (i32, i32) {
    %c0_i32 = arith.constant 0 : i32
    %c0_i32_0 = arith.constant 0 : i32
    return %arg1, %c0_i32 : i32, i32
  }
  func.func @transform_1(%arg0: i32, %arg1: i32) -> (i32, i32) {
    %c0_i32 = arith.constant 0 : i32
    %c0_i32_0 = arith.constant 0 : i32
    return %arg1, %c0_i32 : i32, i32
  }
  func.func @transform_2(%arg0: i32, %arg1: i32) -> (i32, i32) {
    %c0_i32 = arith.constant 0 : i32
    %c0_i32_0 = arith.constant 0 : i32
    return %c0_i32, %arg0 : i32, i32
  }
  func.func @transform_3(%arg0: i32, %arg1: i32) -> (i32, i32) {
    %c0_i32 = arith.constant 0 : i32
    %c0_i32_0 = arith.constant 0 : i32
    return %c0_i32, %arg0 : i32, i32
  }
  func.func @transform_4(%arg0: i32, %arg1: i32) -> (i32, i32) {
    %c0_i32 = arith.constant 0 : i32
    return %arg1, %arg0 : i32, i32
  }
}

</mosaic_0001>

<bundles_post_ra>
// kernel: tpu_custom_call.1
= control target key start
LH: loop header
LB: loop body
LE: loop exit
PB: predicated region body
PF: predicated region fallthrough
CT: control target
= control target key end

     0   :  { %s1908_s0 = inlined_call_operand.hbm [shape: bf16[32,64], index: 0, kind: input, shape index: {}]   ;;  %s1909_s1 = inlined_call_operand.hbm [shape: bf16[32,128], index: 1, kind: input, shape index: {}]   ;;  %s1910_s2 = inlined_call_operand.hbm [shape: bf16[192,512], index: 2, kind: input, shape index: {}]   ;;  %s1911_s3 = inlined_call_operand.hbm [shape: f32[4,512], index: 3, kind: input, shape index: {}]   ;;  %s1912_s4 = inlined_call_operand.hbm [shape: f32[32,512], index: 4, kind: output, shape index: {}]  }
   0x1   :  { %1928 = sst [smem:[#allocation26_spill]] %s1908_s0 }
   0x2   :  { %1929 = sst [smem:[#allocation27_spill]] %s1909_s1 }
   0x3   :  { %1930 = sst [smem:[#allocation28_spill]] %s1910_s2 }
   0x4   :  { %1931 = sst [smem:[#allocation29_spill]] %s1912_s4 }
   0x5   :  { %9 = vsyncpa [#allocation3], 0 }
   0x6   :  { %11 = vsyncpa [#allocation3 + $0x1], 0 }
   0x7   :  { %12 = vsyncpa [#allocation6], 0 }
   0x8   :  { %14 = vsyncpa [#allocation6 + $0x1], 0 }
   0x9   :  { %15 = vsyncpa [#allocation9], 0 }
   0xa   :  { %17 = vsyncpa [#allocation9 + $0x1], 0 }
   0xb   :  { %18 = vsyncpa [#allocation4], 0 }
   0xc   :  { %20 = vsyncpa [#allocation4 + $0x1], 0  ;;  %s1441_s15 = smov 0   ;;  %s1443_s16 = smov 0  }
   0xd   :  { %s1445_s17 = smov 0   ;;  %s1447_s18 = smov 0  }
   0xe   :  { %s1449_s19 = smov 0   ;;  %s1451_s20 = smov 0  }
   0xf   :  { %s1453_s21 = smov 0   ;;  %s1455_s22 = smov 0  }
  0x10   :  { %s1457_s23 = smov 0   ;;  %s1459_s24 = smov 0  }
  0x11   :  { %s1461_s25 = smov 0   ;;  %s1463_s26 = smov 0  }
  0x12   :  { %s1465_s27 = smov 0   ;;  %s1467_s28 = smov 0  }
  0x13 LB: > { %1932 = sst [smem:[#allocation16_spill]] %s1348_s15  ;;  %s1510_s29 = sadd.s32 4294967295, %s1400_s28   ;;  %s1400_s28 = sphi %s1467_s28, %s26_s28   ;;  %s1396_s27 = sphi %s1465_s27, %s1988_s27   ;;  %s1392_s26 = sphi %s1463_s26, %s1987_s26   ;;  %s1388_s25 = sphi %s1461_s25, %s1986_s25   ;;  %s1384_s24 = sphi %s1459_s24, %s1985_s24   ;;  %s1380_s23 = sphi %s1457_s23, %s1984_s23   ;;  %s1376_s22 = sphi %s1455_s22, %s1983_s22   ;;  %s1372_s21 = sphi %s1453_s21, %s1982_s21   ;;  %s1368_s20 = sphi %s1451_s20, %s1981_s20   ;;  %s1364_s19 = sphi %s1449_s19, %s1980_s19   ;;  %s1360_s18 = sphi %s1447_s18, %s1979_s18   ;;  %s1356_s17 = sphi %s1445_s17, %s1972_s17   ;;  %s1352_s16 = sphi %s1443_s16, %s1978_s16   ;;  %s1348_s15 = sphi %s1441_s15, %s1977_s15  }
  0x14   : > { %1933 = sst [smem:[#allocation17_spill]] %s1356_s17  ;;  %s35_s5 = sadd.s32 1, %s1392_s26 }
  0x15   : > { %1934 = sst [smem:[#allocation18_spill]] %s1384_s24  ;;  %s38_s6 = sadd.s32 1, %s1396_s27 }
  0x16   : > { %p36_p0 = scmp.ge.s32.totalorder %s35_s5, 2  ;;  %s45_s7 = sadd.s32 1, %s1380_s23 }
  0x17   : > { %p52_p1 = scmp.ne.s32.totalorder %s1380_s23, %s1376_s22  ;;  %p53_p2 = scmp.eq.s32.totalorder %s1400_s28, 0 }
  0x18   : > { %s1990_s5 = smov (%p36_p0, %s35_s5), 0  ;;  %s1992_s6 = smov (!%p36_p0, %s38_s6), %s1396_s27 }
  0x19   : > { %1935 = sst [smem:[#allocation19_spill]] %s1990_s5  ;;  %s42_s8 = ssub.s32 %s1392_s26, %s1990_s5 }
  0x1a   : > { %p1526_p3 = por %p53_p2, %p52_p1  ;;  %p40_p4 = scmp.ge.s32.totalorder %s1992_s6, 2 }
  0x1b   : > { %p43_p5 = scmp.eq.s32.totalorder %s42_s8, 0  ;;  %p58_p6 = scmp.ne.s32.totalorder %s1376_s22, %s1372_s21 }
  0x1c   : > { %p59_p7 = scmp.eq.s32.totalorder %s1510_s29, 0  ;;  %s1994_s6 = smov (%p40_p4, %s1992_s6), 0 }
  0x1d   : > { %1937 = sst [smem:[#allocation20_spill]] %s1994_s6  ;;  %s94_s12 = ssub.s32 %s1396_s27, %s1994_s6 }
  0x1e   : > { %s1535_s10 = scalar_select %p43_p5, %s1380_s23, %s45_s7  }
  0x1f   : > { %p1537_p8 = por %p59_p7, %p58_p6  ;;  %p95_p9 = scmp.eq.s32.totalorder %s94_s12, 0 }
  0x20   : > { %1938 = sst [smem:[#allocation21_spill]] %s1535_s10  ;;  %s97_s13 = sadd.s32 1, %s1368_s20 }
  0x21   : > { %s1939_s11 = scalar_select %p1537_p8, 1, 0 }
  0x22   : > { %p104_p10 = scmp.ne.s32.totalorder %s1368_s20, %s1364_s19  ;;  %p110_p11 = scmp.ne.s32.totalorder %s1364_s19, %s1360_s18 }
  0x23   : > { %s1549_s14 = scalar_select %p95_p9, %s1368_s20, %s97_s13  }
  0x24   : > { %p1553_p12 = por %p104_p10, %p53_p2  ;;  %p1557_p13 = por %p110_p11, %p59_p7 }
  0x25   : > { %1940 = sst [smem:[#allocation22_spill]] %s1549_s14  ;;  %s148_s30 = sor.u32 %s94_s12, %s42_s8 }
  0x26   : > { %s1942_s7 = scalar_select %p1557_p13, 1, 0 }
  0x27   : > { %s151_s6 = sadd.s32 1, %s1356_s17  ;;  %p149_p0 = scmp.eq.s32.totalorder %s148_s30, 0 }
  0x28   : > { %p161_p1 = scmp.ne.s32.totalorder %s1356_s17, %s1352_s16  ;;  %p162_p4 = scmp.eq.s32.totalorder %s1510_s29, 3 }
  0x29   : > { %p167_p5 = scmp.ne.s32.totalorder %s1352_s16, %s1348_s15  ;;  %s1946_s5 = sadd.s32 4294967294, %s1400_s28  }
  0x2a   : > { %s1568_s18 = scalar_select %p149_p0, %s1356_s17, %s151_s6  }
  0x2b   : > { %p1570_p2 = por %p162_p4, %p161_p1  ;;  %p168_p6 = scmp.eq.s32.totalorder %s1946_s5, 3 }
  0x2c   : > { %1943 = sst [smem:[#allocation23_spill]] %s1568_s18  ;;  %p961_p7 = scmp.lt.s32.totalorder %s1400_s28, 4 }
  0x2d   : > { %s1944_s13 = scalar_select %p1570_p2, 1, 0 }
  0x2e   : > { %p1577_p9 = por %p168_p6, %p167_p5  ;;  %s1916_s8 = sand.u32 1, %s1380_s23  }
  0x2f   : > { %1945 = sst [smem:[#allocation24_spill]] %s1944_s13  ;;  %s1584_s30 = sshll.u32 %s1916_s8, 3 }
  0x30   : > { %s1947_s10 = scalar_select %p1577_p9, 1, 0 }
  0x31   : > { %s1920_s12 = sshll.u32 %s1392_s26, 7  ;;  %p1589_p10 = pnand %p961_p7, %p1526_p3 }
  0x32   : > { %1948 = sst [smem:[#allocation25_spill]] %s1947_s10  ;;  %s209_s14 = sand.u32 1, %s1400_s28  }
  0x33   : > { %s1950_s1 = sld [smem:[#allocation27_spill]]  ;;  %s213_s8 = scalar_lea.vmem [#allocation5], %s1584_s30 }
  0x34   : > { %s220_s10 = sshll.u32 %s213_s8, 4  ;;  %p1604_p3 = pnand %p961_p7, %p1553_p12  ;;  %s1608_s10 = int_to_ptr.vmem [resolvable:$true] %s220_s10 }
  0x35   : > { %s1611_s15 = scalar_lea.sflag [#allocation6], %s209_s14  ;;  %p1124_p1 = pneg %p1589_p10 }
  0x39   : > { %s1599_s17 = scalar_lea.hbm %s1950_s1, %s1920_s12  ;;  %s1127_s21 = scalar_lea.hbm %s1950_s1, 256 }
  0x3a   : > { %s1122_s4 = scalar_lea.hbm %s1599_s17, 128  ;;  %p1128_p12 = scmp.lt.u32.totalorder %s1599_s17, %s1950_s1 }
  0x3b   : > { %p1123_p0 = scmp.ne.s32.totalorder %s1599_s17, %s1122_s4  ;;  %p1129_p6 = scmp.lt.u32.totalorder %s1127_s21, %s1122_s4 }
  0x3c   : > { %p1131_p11 = scmp.lt.u32.totalorder %s1122_s4, %s1599_s17 }
  0x3d   : > { %p1125_p4 = pnand %p1124_p1, %p1123_p0  ;;  %p1130_p7 = por %p1129_p6, %p1128_p12 }
  0x3f   : > { %p1126_p5 = pneg %p1125_p4  ;;  %p1132_p9 = por %p1131_p11, %p1130_p7 }
  0x41   : > { %p1133_p2 = pnand %p1132_p9, %p1126_p5 }
  0x43   : > { %1136 = shalt.err (!%p1133_p2)
}
  0x44   : > { %s1137_s14 = scalar_lea.vmem %s1608_s10, 128  ;;  %s1402_s18 = smov [#allocation5]  }
  0x45   : > { %p1138_p0 = scmp.ne.s32.totalorder %s1608_s10, %s1137_s14  ;;  %s1142_s8 = sshll.u32 %s1402_s18, 4  ;;  %s1143_s8 = int_to_ptr.vmem [resolvable:$false] %s1142_s8 }
  0x46   : > { %s1144_s12 = scalar_lea.vmem %s1143_s8, 256  ;;  %p1145_p8 = scmp.lt.s32.totalorder %s1608_s10, %s1143_s8 }
  0x47   : > { %p1140_p4 = pnand %p1138_p0, %p1124_p1  ;;  %p1146_p12 = scmp.lt.s32.totalorder %s1144_s12, %s1137_s14 }
  0x49   : > { %p1141_p13 = pneg %p1140_p4  ;;  %p1147_p6 = por %p1146_p12, %p1145_p8 }
  0x4b   : > { %p1148_p11 = pnand %p1147_p6, %p1141_p13 }
  0x4d   : > { %1151 = shalt.err (!%p1148_p11)
}
  0x4e   : > { %s1926_s4 = smov 64   ;;  %s1927_s21 = smov 4  }
  0x4f   : > { %950 = dma.hbm_to_vmem [thread:$0]  (!%p1589_p10), %s1599_s17, 128, %s1608_s10, %s1611_s15, %s1926_s4, %s1926_s4, %s1927_s21  }
  0x50   : > { %p268_p8 = scmp.lt.s32.totalorder %s1400_s28, 5  ;;  %p1952_p13 = scmp.ge.s32.totalorder %s1400_s28, 1 }
  0x51   : > { %s1954_s14 = sshll.u32 %s1392_s26, 7  ;;  %s1955_s0 = sld [smem:[#allocation26_spill]] }
  0x52   : > { %p1645_p2 = pnand %p1952_p13, %p268_p8  ;;  %s192_s1 = scalar_lea.vmem [#allocation2], %s1584_s30 }
  0x53   : > { %s199_s13 = sshll.u32 %s192_s1, 4  ;;  %s1658_s24 = sand.u32 1, %s1368_s20   ;;  %s1660_s13 = int_to_ptr.vmem [resolvable:$true] %s199_s13 }
  0x54   : > { %s1953_s5 = scalar_select %p1645_p2, 1, 0 }
  0x55   : > { %s932_s17 = smul.u32 192, %s1658_s24  ;;  %s1956_s10 = sand.u32 1, %s1380_s23  }
  0x56   : > { %s1665_s4 = scalar_lea.sflag [#allocation3], %s1956_s10 }
  0x57   : > { %s1654_s12 = scalar_lea.hbm %s1955_s0, %s1954_s14  ;;  %s1157_s30 = scalar_lea.hbm %s1955_s0, 256 }
  0x58   : > { %s1152_s21 = scalar_lea.hbm %s1654_s12, 128  ;;  %p1158_p0 = scmp.lt.u32.totalorder %s1654_s12, %s1955_s0 }
  0x59   : > { %p1153_p9 = scmp.ne.s32.totalorder %s1654_s12, %s1152_s21  ;;  %p1159_p4 = scmp.lt.u32.totalorder %s1157_s30, %s1152_s21 }
  0x5a   : > { %p1161_p6 = scmp.lt.u32.totalorder %s1152_s21, %s1654_s12 }
  0x5b   : > { %p1155_p5 = pnand %p1153_p9, %p1124_p1  ;;  %p1160_p12 = por %p1159_p4, %p1158_p0 }
  0x5d   : > { %p1156_p7 = pneg %p1155_p5  ;;  %p1162_p11 = por %p1161_p6, %p1160_p12 }
  0x5f   : > { %p1163_p8 = pnand %p1162_p11, %p1156_p7 }
  0x61   : > { %1166 = shalt.err (!%p1163_p8)
}
  0x62   : > { %s1167_s10 = scalar_lea.vmem %s1660_s13, 128  ;;  %s1405_s14 = smov [#allocation2]  }
  0x63   : > { %p1168_p13 = scmp.ne.s32.totalorder %s1660_s13, %s1167_s10  ;;  %s1172_s18 = sshll.u32 %s1405_s14, 4  ;;  %s1173_s18 = int_to_ptr.vmem [resolvable:$false] %s1172_s18 }
  0x64   : > { %s1174_s1 = scalar_lea.vmem %s1173_s18, 256  ;;  %p1175_p2 = scmp.lt.s32.totalorder %s1660_s13, %s1173_s18 }
  0x65   : > { %p1170_p9 = pnand %p1168_p13, %p1124_p1  ;;  %p1176_p0 = scmp.lt.s32.totalorder %s1174_s1, %s1167_s10 }
  0x67   : > { %p1171_p5 = pneg %p1170_p9  ;;  %p1177_p4 = por %p1176_p0, %p1175_p2 }
  0x69   : > { %p1178_p12 = pnand %p1177_p4, %p1171_p5 }
  0x6b   : > { %1181 = shalt.err (!%p1178_p12)
}
  0x6c   : > { %s1957_s21 = smov 4   ;;  %s1958_s30 = smov 64  }
  0x6d   : > { %947 = dma.hbm_to_vmem [thread:$0]  (!%p1589_p10), %s1654_s12, 128, %s1660_s13, %s1665_s4, %s1958_s30, %s1958_s30, %s1957_s21  }
  0x6e   : > { %s929_s8 = sshll.u32 %s1396_s27, 7  ;;  %s1959_s2 = sld [smem:[#allocation28_spill]] }
  0x6f   : > { %s234_s6 = scalar_lea.vmem [#allocation7], %s932_s17  ;;  %p1184_p10 = pneg %p1604_p3 }
  0x70   : > { %s241_s1 = sshll.u32 %s234_s6, 4  ;;  %s1704_s1 = int_to_ptr.vmem [resolvable:$true] %s241_s1 }
  0x74   : > { %s1700_s18 = scalar_lea.hbm %s1959_s2, %s929_s8  ;;  %s1187_s12 = scalar_lea.hbm %s1959_s2, 6144 }
  0x75   : > { %s1182_s0 = scalar_lea.hbm %s1700_s18, 3072  ;;  %p1188_p6 = scmp.lt.u32.totalorder %s1700_s18, %s1959_s2 }
  0x76   : > { %p1183_p1 = scmp.ne.s32.totalorder %s1700_s18, %s1182_s0  ;;  %p1189_p11 = scmp.lt.u32.totalorder %s1187_s12, %s1182_s0 }
  0x77   : > { %p1191_p13 = scmp.lt.u32.totalorder %s1182_s0, %s1700_s18 }
  0x78   : > { %p1185_p2 = pnand %p1184_p10, %p1183_p1  ;;  %p1190_p8 = por %p1189_p11, %p1188_p6 }
  0x7a   : > { %p1186_p7 = pneg %p1185_p2  ;;  %p1192_p9 = por %p1191_p13, %p1190_p8 }
  0x7c   : > { %p1193_p5 = pnand %p1192_p9, %p1186_p7 }
  0x7e   : > { %1196 = shalt.err (!%p1193_p5)
}
  0x7f   : > { %s1197_s17 = scalar_lea.vmem %s1704_s1, 3072  ;;  %s1406_s10 = smov [#allocation7]  }
  0x80   : > { %p1198_p0 = scmp.ne.s32.totalorder %s1704_s1, %s1197_s17  ;;  %s1202_s14 = sshll.u32 %s1406_s10, 4  ;;  %s1203_s14 = int_to_ptr.vmem [resolvable:$false] %s1202_s14 }
  0x81   : > { %s1204_s6 = scalar_lea.vmem %s1203_s14, 6144  ;;  %p1205_p1 = scmp.lt.s32.totalorder %s1704_s1, %s1203_s14 }
  0x82   : > { %p1200_p4 = pnand %p1198_p0, %p1184_p10  ;;  %p1206_p2 = scmp.lt.s32.totalorder %s1204_s6, %s1197_s17 }
  0x84   : > { %p1201_p12 = pneg %p1200_p4  ;;  %p1207_p6 = por %p1206_p2, %p1205_p1 }
  0x86   : > { %p1208_p11 = pnand %p1207_p6, %p1201_p12 }
  0x88   : > { %1211 = shalt.err (!%p1208_p11)
}
  0x89   : > { %s1407_s0 = smov 256   ;;  %s1408_s13 = smov 128  }
  0x8a   : > { %s1409_s4 = smov 8   ;;  %s885_s12 = sshll.u32 %s1658_s24, 3 }
  0x8b   : > { %953 = dma.hbm_to_vmem [thread:$0]  (!%p1604_p3), %s1700_s18, 3072, %s1704_s1, %s1611_s15, %s1407_s0, %s1408_s13, %s1409_s4  }
  0x8c   : > { %s1738_s17 = scalar_lea.hbm %s1911_s3, %s929_s8  ;;  %s255_s10 = scalar_lea.vmem [#allocation8], %s885_s12 }
  0x8d   : > { %s263_s14 = sshll.u32 %s255_s10, 4  ;;  %s252_s6 = scalar_lea.sflag [#allocation9], %s1658_s24  ;;  %s264_s14 = int_to_ptr.vmem [resolvable:$true] %s263_s14 }
  0x8e   : > { %s1212_s2 = scalar_lea.hbm %s1738_s17, 128  ;;  %s1217_s1 = scalar_lea.hbm %s1911_s3, 256 }
  0x8f   : > { %p1213_p7 = scmp.ne.s32.totalorder %s1738_s17, %s1212_s2  ;;  %p1218_p9 = scmp.lt.u32.totalorder %s1738_s17, %s1911_s3 }
  0x90   : > { %p1219_p5 = scmp.lt.u32.totalorder %s1217_s1, %s1212_s2  ;;  %p1221_p4 = scmp.lt.u32.totalorder %s1212_s2, %s1738_s17 }
  0x91   : > { %p1215_p8 = pnand %p1213_p7, %p1184_p10 }
  0x92   : > { %p1220_p0 = por %p1219_p5, %p1218_p9 }
  0x93   : > { %p1216_p13 = pneg %p1215_p8 }
  0x94   : > { %p1222_p12 = por %p1221_p4, %p1220_p0 }
  0x96   : > { %p1223_p1 = pnand %p1222_p12, %p1216_p13 }
  0x98   : > { %1226 = shalt.err (!%p1223_p1)
}
  0x99   : > { %s1227_s24 = scalar_lea.vmem %s264_s14, 128  ;;  %s1410_s13 = smov [#allocation8]  }
  0x9a   : > { %p1228_p2 = scmp.ne.s32.totalorder %s264_s14, %s1227_s24  ;;  %s1232_s4 = sshll.u32 %s1410_s13, 4  ;;  %s1233_s4 = int_to_ptr.vmem [resolvable:$false] %s1232_s4 }
  0x9b   : > { %s1234_s12 = scalar_lea.vmem %s1233_s4, 256  ;;  %p1235_p7 = scmp.lt.s32.totalorder %s264_s14, %s1233_s4 }
  0x9c   : > { %p1230_p6 = pnand %p1228_p2, %p1184_p10  ;;  %p1236_p8 = scmp.lt.s32.totalorder %s1234_s12, %s1227_s24 }
  0x9e   : > { %p1231_p11 = pneg %p1230_p6  ;;  %p1237_p5 = por %p1236_p8, %p1235_p7 }
  0xa0   : > { %p1238_p9 = pnand %p1237_p5, %p1231_p11 }
  0xa2   : > { %1241 = shalt.err (!%p1238_p9)
}
  0xa3   : > { %956 = dma.hbm_to_vmem [thread:$0]  (!%p1604_p3), %s1738_s17, 128, %s264_s14, %s252_s6  }
  0xa4   : > { %p1960_p13 = scmp.ne.s32.totalorder %s1953_s5, 0 }
  0xa5   : > { %s274_s2 = sand.u32 (!%p1960_p13), 1, %s1376_s22   ;;  %p1961_p10 = scmp.ne.s32.totalorder (!%p1960_p13), %s1939_s11, 0 }
  0xa6   : > { %272 = sbr.rel (%p1960_p13) target bundleno = 458 (0x1ca), region = 36  ;;  %s1763_s21 = sshll.u32 (!%p1960_p13), %s274_s2, 3 }
  0xa7   : > { %s275_s30 = scalar_lea.sflag (!%p1960_p13), [#allocation3], %s274_s2  ;;  %s278_s10 = scalar_lea.vmem (!%p1960_p13), [#allocation2], %s1763_s21 }
  0xad   : > { %1327 = dma.done.wait (%p1961_p10), %s275_s30, 128  }
  0xae   : > { %1329 = vsyncadd (%p1961_p10), %s275_s30, 4294967168  ;;  %s283_s9 = sand.u32 1, %s1510_s29   ;;  %s287_s5 = scalar_lea.vmem [#allocation5], %s1763_s21 }
  0xaf   : > { %s284_s17 = scalar_lea.sflag [#allocation6], %s283_s9 }
  0xb0   : > { %1331 = dma.done.wait (%p1961_p10), %s284_s17, 128  }
  0xb1   : > { %1333 = vsyncadd (%p1961_p10), %s284_s17, 4294967168  ;;  %s294_s14 = sand.u32 1, %s1364_s19   ;;  %p1962_p3 = scmp.ne.s32.totalorder %s1942_s7, 0 }
  0xb2   : > { %s933_s6 = smul.u32 192, %s294_s14 }
  0xb4   : > { %s1777_s15 = scalar_lea.vmem [#allocation7], %s933_s6 }
  0xb5   : > { %1335 = dma.done.wait (%p1962_p3), %s284_s17, 3072  }
  0xb6   : > { %1337 = vsyncadd (%p1962_p3), %s284_s17, 4294964224  ;;  %s891_s29 = sshll.u32 %s294_s14, 3  ;;  %s302_s18 = scalar_lea.sflag [#allocation9], %s294_s14 }
  0xb7   : > { %s1783_s1 = scalar_lea.vmem [#allocation8], %s891_s29 }
  0xb8   : > { %1339 = dma.done.wait (%p1962_p3), %s302_s18, 128  }
  0xb9   : > { %1341 = vsyncadd (%p1962_p3), %s302_s18, 4294967168  ;;  %v1411_v0 = vmov 0   ;;  %v1084_v1 = vld [vmem:[%s1777_s15 + $0x44] ss:$8 sps:$4 sm:$0xff]   ;;  %v1086_v2 = vld [vmem:[%s1777_s15 + $0x40] ss:$8 sps:$4 sm:$0xff]   ;;  %v603_v27 = vlaneseq }
  0xba   : > { %590 = vmatprep.mubr.bf16.mxu1 %v1411_v0  ;;  %443 = vmatprep.mubr.bf16.mxu0 %v1411_v0  ;;  %v1087_v3 = vld [vmem:[%s1777_s15 + $0x54] ss:$8 sps:$4 sm:$0xff]   ;;  %v1089_v4 = vld [vmem:[%s1777_s15 + $0x50] ss:$8 sps:$4 sm:$0xff]   ;;  %v1090_v5 = vld [vmem:[%s1777_s15 + $0x64] ss:$8 sps:$4 sm:$0xff]  }
  0xbb   : > { %558 = vmatprep.subr.bf16.mxu1 %v1084_v1  ;;  %v1092_v6 = vld [vmem:[%s1777_s15 + $0x60] ss:$8 sps:$4 sm:$0xff]   ;;  %v1098_v7 = vld [vmem:[%s1777_s15 + $0x4] ss:$8 sps:$4 sm:$0xff]   ;;  %v1093_v9 = vld [vmem:[%s1777_s15 + $0x74] ss:$8 sps:$4 sm:$0xff]  }
  0xbc   : > { %559 = vmatpush1.bf16.msra.mxu1 %v1086_v2  ;;  %v1101_v8 = vld [vmem:[%s1777_s15] ss:$8 sps:$4 sm:$0xff]   ;;  %411 = vmatprep.subr.bf16.mxu0 %v1098_v7  ;;  %v1104_v10 = vld [vmem:[%s1777_s15 + $0x14] ss:$8 sps:$4 sm:$0xff]   ;;  %v1107_v11 = vld [vmem:[%s1777_s15 + $0x10] ss:$8 sps:$4 sm:$0xff]  }
  0xbd   : > { %560 = vmatprep.subr.bf16.mxu1 %v1087_v3  ;;  %412 = vmatpush1.bf16.msra.mxu0 %v1101_v8  ;;  %v1095_v12 = vld [vmem:[%s1777_s15 + $0x70] ss:$8 sps:$4 sm:$0xff]   ;;  %v1096_v13 = vld [vmem:[%s1777_s15 + $0x84] ss:$8 sps:$4 sm:$0xff]   ;;  %v1113_v15 = vld [vmem:[%s1777_s15 + $0x20] ss:$8 sps:$4 sm:$0xff]  }
  0xbe   : > { %413 = vmatprep.subr.bf16.mxu0 %v1104_v10  ;;  %v1110_v14 = vld [vmem:[%s1777_s15 + $0x24] ss:$8 sps:$4 sm:$0xff]   ;;  %v1100_v16 = vld [vmem:[%s1777_s15 + $0x80] ss:$8 sps:$4 sm:$0xff]   ;;  %v1116_v17 = vld [vmem:[%s1777_s15 + $0x34] ss:$8 sps:$4 sm:$0xff]  }
  0xbf   : > { %v1102_v18 = vld [vmem:[%s1777_s15 + $0x94] ss:$8 sps:$4 sm:$0xff]   ;;  %v1119_v19 = vld [vmem:[%s1777_s15 + $0x30] ss:$8 sps:$4 sm:$0xff]   ;;  %v1108_v21 = vld [vmem:[%s1777_s15 + $0xa4] ss:$8 sps:$4 sm:$0xff]  }
  0xc0   : > { %561 = vmatpush1.bf16.msra.mxu1 %v1089_v4  ;;  %v1106_v20 = vld [vmem:[%s1777_s15 + $0x90] ss:$8 sps:$4 sm:$0xff]   ;;  %v1121_v22 = vld [vmem:[%s278_s10] sm:$0xff]   ;;  %vm407_vm0 = vcmask 523264   ;;  %v1114_v24 = vld [vmem:[%s1777_s15 + $0xb4] ss:$8 sps:$4 sm:$0xff]  }
  0xc1   : > { %562 = vmatprep.subr.bf16.mxu1 %v1090_v5  ;;  %414 = vmatpush1.bf16.msra.mxu0 %v1107_v11  ;;  %v1112_v23 = vld [vmem:[%s1777_s15 + $0xa0] ss:$8 sps:$4 sm:$0xff]   ;;  %v1118_v25 = vld [vmem:[%s1777_s15 + $0xb0] ss:$8 sps:$4 sm:$0xff]   ;;  %v604_v28 = vshrl.u32 %v603_v27, 7  ;;  %s1963_s11 = sld [smem:[#allocation18_spill]] }
  0xc2   : > { %415 = vmatprep.subr.bf16.mxu0 %v1110_v14  ;;  %v1120_v26 = vld [vmem:[%s287_s5] sm:$0xff]   ;;  %v601_v31 = vld [vmem:[%s1783_s1] sm:$0xff]  ;;  %s342_s7 = sand.u32 1, %s1352_s16   ;;  %s922_s0 = sshll.u32 %s1388_s25, 1 }
  0xc3   : > { %v605_v29 = vsub.s32 0, %v604_v28  ;;  %v653_v30 = vsub.s32 2, %v604_v28  ;;  %v609_v32 = vsub.s32 4, %v604_v28  ;;  %v657_v33 = vsub.s32 6, %v604_v28  ;;  %s892_s8 = sshll.u32 %s342_s7, 5  ;;  %s1964_s25 = sld [smem:[#allocation24_spill]] }
  0xc4   : > { %563 = vmatpush1.bf16.msra.mxu1 %v1092_v6  ;;  %v627_v35 = vsub.s32 1, %v604_v28  ;;  %v631_v37 = vsub.s32 5, %v604_v28  ;;  %v675_v40 = vsub.s32 3, %v604_v28  ;;  %v679_v44 = vsub.s32 7, %v604_v28  ;;  %s344_s4 = scalar_lea.vmem [#allocation10], %s892_s8  ;;  %s1965_s10 = sld [smem:[#allocation29_spill]] }
  0xc5   : > { %564 = vmatprep.subr.bf16.mxu1 %v1093_v9  ;;  %416 = vmatpush1.bf16.msra.mxu0 %v1113_v15  ;;  %v606_v38 = vrot.slane %v601_v31, %v605_v29  ;;  %v654_v39 = vrot.slane %v601_v31, %v653_v30  ;;  %v610_v42 = vrot.slane %v601_v31, %v609_v32  ;;  %s720_s12 = sshll.u32 %s344_s4, 4  ;;  %s1832_s17 = scalar_lea.sflag [#allocation4], %s342_s7  ;;  %s1823_s12 = int_to_ptr.vmem [resolvable:$true] %s720_s12 }
  0xc6   : > { %417 = vmatprep.subr.bf16.mxu0 %v1116_v17  ;;  %v658_v43 = vrot.slane %v601_v31, %v657_v33  ;;  %v628_v46 = vrot.slane %v601_v31, %v627_v35  ;;  %v632_v47 = vrot.slane %v601_v31, %v631_v37  ;;  %v676_v50 = vrot.slane %v601_v31, %v675_v40  ;;  %s1242_s5 = scalar_lea.vmem %s1823_s12, 512  ;;  %s1412_s14 = smov [#allocation10]  }
  0xc7   : > { %v616_v48 = vrot.slane %v606_v38, %v605_v29  ;;  %v664_v49 = vrot.slane %v654_v39, %v653_v30  ;;  %v620_v51 = vrot.slane %v610_v42, %v605_v29  ;;  %v680_v53 = vrot.slane %v601_v31, %v679_v44  ;;  %s931_s24 = sshll.u32 %s1963_s11, 3  ;;  %p1243_p0 = scmp.ne.s32.totalorder %s1823_s12, %s1242_s5 }
  0xc8   : > { %565 = vmatpush1.bf16.msra.mxu1 %v1095_v12  ;;  %v668_v52 = vrot.slane %v658_v43, %v653_v30  ;;  %v638_v54 = vrot.slane %v628_v46, %v627_v35  ;;  %v642_v56 = vrot.slane %v632_v47, %v627_v35  ;;  %v686_v59 = vrot.slane %v676_v50, %v675_v40  ;;  %s717_s13 = sadd.s32 %s931_s24, %s922_s0  ;;  %s1246_s6 = sshll.u32 %s1412_s14, 4  ;;  %s1247_s6 = int_to_ptr.vmem [resolvable:$false] %s1246_s6 }
  0xc9   : > { %566 = vmatprep.subr.bf16.mxu1 %v1096_v13  ;;  %418 = vmatpush1.bf16.msra.mxu0 %v1119_v19  ;;  %v690_v63 = vrot.slane %v680_v53, %v675_v40  ;;  %s924_s2 = sshll.u32 %s717_s13, 7  ;;  %p1966_p4 = scmp.ne.s32.totalorder %s1964_s25, 0 }
  0xca   : > { %s1828_s9 = scalar_lea.hbm %s1965_s10, %s924_s2  ;;  %s1248_s15 = scalar_lea.vmem %s1247_s6, 1024 }
  0xcb   : > { %p1244_p12 = pnand %p1243_p0, %p1966_p4  ;;  %p1249_p2 = scmp.lt.s32.totalorder %s1823_s12, %s1247_s6 }
  0xcc   : > { %567 = vmatpush1.bf16.msra.mxu1 %v1100_v16  ;;  %902 = vmatmul.mubr.msk.bf16.vlgmr.msra.gmra.mrb[0].mxu0 %vm407_vm0, %v1121_v22  ;;  %p1250_p6 = scmp.lt.s32.totalorder %s1248_s15, %s1242_s5 }
  0xcd   : > { %568 = vmatprep.subr.bf16.mxu1 %v1102_v18  ;;  %p1245_p1 = pneg %p1244_p12 }
  0xce   : > { %p1251_p11 = por %p1250_p6, %p1249_p2 }
  0xd0   : > { %569 = vmatpush1.bf16.msra.mxu1 %v1106_v20  ;;  %p1252_p7 = pnand %p1251_p11, %p1245_p1 }
  0xd1   : > { %570 = vmatprep.subr.bf16.mxu1 %v1108_v21 }
  0xd4   : > { %571 = vmatpush1.bf16.msra.mxu1 %v1112_v23 }
  0xd5   : > { %572 = vmatprep.subr.bf16.mxu1 %v1114_v24 }
  0xd8   : > { %573 = vmatpush1.bf16.msra.mxu1 %v1118_v25 }
  0xdb   : > { %591 = vmatmul.mubr.bf16.vlgmr.msra.gmra.mrb[0].mxu1 %v1120_v26 }
 0x19f   : > { %v445_v34 = vpop.f32.mrb[0].mxu0 }
 0x1a0   : > { %v447_v36 = vpop.f32.mrb[1].mxu0 }
 0x1a1   : > { %v449_v41 = vpop.f32.mrb[2].mxu0 }
 0x1a2   : > { %v451_v45 = vpop.f32.mrb[3].mxu0 }
 0x1ae   : > { %v592_v55 = vpop.f32.mrb[0].mxu1 }
 0x1af   : > { %v621_v57 = vmul.f32 %v616_v48, %v592_v55  ;;  %v669_v58 = vmul.f32 %v664_v49, %v592_v55  ;;  %v594_v60 = vpop.f32.mrb[1].mxu1 }
 0x1b0   : > { %v622_v61 = vmul.f32 %v620_v51, %v594_v60  ;;  %v670_v62 = vmul.f32 %v668_v52, %v594_v60  ;;  %v596_v0 = vpop.f32.mrb[2].mxu1 }
 0x1b1   : > { %v643_v1 = vadd.f32 %v638_v54, %v621_v57  ;;  %v623_v2 = vmul.f32 %v616_v48, %v596_v0  ;;  %v671_v3 = vmul.f32 %v664_v49, %v596_v0  ;;  %v598_v4 = vpop.f32.mrb[3].mxu1  ;;  %v691_v8 = vadd.f32 %v686_v59, %v669_v58 }
 0x1b2   : > { %v644_v5 = vadd.f32 %v642_v56, %v622_v61  ;;  %v624_v6 = vmul.f32 %v620_v51, %v598_v4  ;;  %v672_v7 = vmul.f32 %v668_v52, %v598_v4  ;;  %v692_v11 = vadd.f32 %v690_v63, %v670_v62 }
 0x1b3   : > { %v647_v9 = vmul.f32 %v643_v1, %v445_v34  ;;  %v645_v10 = vadd.f32 %v638_v54, %v623_v2  ;;  %v693_v15 = vadd.f32 %v686_v59, %v671_v3 }
 0x1b4   : > { %v648_v12 = vmul.f32 %v644_v5, %v447_v36  ;;  %v646_v13 = vadd.f32 %v642_v56, %v624_v6  ;;  %v694_v18 = vadd.f32 %v690_v63, %v672_v7 }
 0x1b5   : > { %v695_v14 = vadd.f32 %v691_v8, %v647_v9  ;;  %v649_v16 = vmul.f32 %v645_v10, %v449_v41 }
 0x1b6   : > { %v696_v17 = vadd.f32 %v692_v11, %v648_v12  ;;  %v650_v19 = vmul.f32 %v646_v13, %v451_v45 }
 0x1b7   : > { %699 = vst [vmem:[%s344_s4] sm:$0xff] %v695_v14  ;;  %v697_v20 = vadd.f32 %v693_v15, %v649_v16 }
 0x1b8   : > { %700 = vst [vmem:[%s344_s4 + $0x8] sm:$0xff] %v696_v17  ;;  %v698_v21 = vadd.f32 %v694_v18, %v650_v19 }
 0x1b9   : > { %701 = vst [vmem:[%s344_s4 + $0x10] sm:$0xff] %v697_v20 }
 0x1ba   : > { %702 = vst [vmem:[%s344_s4 + $0x18] sm:$0xff] %v698_v21 }
 0x1bb   : > { %1255 = shalt.err (!%p1252_p7)
}
 0x1bc   : > { %s1256_s29 = scalar_lea.hbm %s1828_s9, 512  ;;  %s1260_s11 = scalar_lea.hbm %s1965_s10, 2048 }
 0x1bd   : > { %p1257_p8 = scmp.ne.s32.totalorder %s1828_s9, %s1256_s29  ;;  %p1261_p13 = scmp.lt.u32.totalorder %s1828_s9, %s1965_s10 }
 0x1be   : > { %p1262_p10 = scmp.lt.u32.totalorder %s1260_s11, %s1256_s29  ;;  %p1264_p0 = scmp.lt.u32.totalorder %s1256_s29, %s1828_s9 }
 0x1bf   : > { %p1258_p5 = pnand %p1257_p8, %p1966_p4 }
 0x1c0   : > { %p1263_p3 = por %p1262_p10, %p1261_p13 }
 0x1c1   : > { %p1259_p9 = pneg %p1258_p5 }
 0x1c2   : > { %p1265_p12 = por %p1264_p0, %p1263_p3 }
 0x1c4   : > { %p1266_p1 = pnand %p1265_p12, %p1259_p9 }
 0x1c6   : > { %1269 = shalt.err (!%p1266_p1)
}
 0x1c7   : > { %s1413_s0 = smov 256   ;;  %s1414_s24 = smov 512  }
 0x1c8   : > { %s1415_s13 = smov 16  }
 0x1c9   : > { %942 = dma.vmem_to_hbm [thread:$0]  (%p1966_p4), %s1823_s12, 512, %s1828_s9, %s1832_s17, %s1413_s0, %s1414_s24, %s1415_s13  }
 0x1ca PF: > { %s1967_s4 = sld [smem:[#allocation16_spill]]  ;;  %s1968_s2 = sld [smem:[#allocation25_spill]] }
 0x1cb   : > { %p962_p2 = scmp.ge.s32.totalorder %s1400_s28, 2 }
 0x1d0   : > { %s735_s21 = sand.u32 1, %s1967_s4   ;;  %p1969_p6 = scmp.ne.s32.totalorder %s1968_s2, 0 }
 0x1d1   : > { %s736_s30 = scalar_lea.sflag [#allocation4], %s735_s21 }
 0x1d2   : > { %p958_p11 = pnand %p962_p2, %p1969_p6 }
 0x1d4   : > { %1343 = dma.done.wait (!%p958_p11), %s736_s30, 512  }
 0x1d5   : > { %1345 = vsyncadd (!%p958_p11), %s736_s30, 4294966784  ;;  %s26_s28 = sadd.s32 1, %s1400_s28   ;;  %s1971_s25 = sld [smem:[#allocation17_spill]] }
 0x1d6   : > { %p1861_p7 = scmp.ge.s32.totalorder %s26_s28, 6   ;;  %s1972_s17 = sld [smem:[#allocation23_spill]] }
 0x1d7   : > { %s1973_s12 = sld [smem:[#allocation22_spill]]  ;;  %s1974_s9 = sld [smem:[#allocation21_spill]] }
 0x1d8   : > { %s1975_s14 = sld [smem:[#allocation19_spill]]  ;;  %s1976_s6 = sld [smem:[#allocation20_spill]] }
 0x1d9   : > { %s1977_s15 = smov %s1352_s16  ;;  %s1979_s18 = smov %s1364_s19 }
 0x1da   : > { %s1980_s19 = smov %s1368_s20  ;;  %s1982_s21 = smov %s1376_s22 }
 0x1db   : > { %s1978_s16 = smov %s1971_s25  ;;  %s1983_s22 = smov %s1380_s23 }
 0x1dc   : > { %s1985_s24 = smov %s1392_s26  ;;  %s1986_s25 = smov %s1396_s27 }
 0x1dd   : > { %s1981_s20 = smov %s1973_s12  ;;  %s1984_s23 = smov %s1974_s9 }
 0x1de   : > { %s1987_s26 = smov %s1975_s14  ;;  %s1988_s27 = smov %s1976_s6 }
 0x1df   :  { %25 = sbr.rel (!%p1861_p7) target bundleno = 19 (0x13), region = 118 }
 0x1e6   :  { %741 = vsyncpa [#allocation3], 1 }
 0x1e7   :  { %743 = vsyncpa [#allocation3 + $0x1], 1 }
 0x1e8   :  { %744 = vsyncpa [#allocation6], 1 }
 0x1e9   :  { %746 = vsyncpa [#allocation6 + $0x1], 1 }
 0x1ea   :  { %747 = vsyncpa [#allocation9], 1 }
 0x1eb   :  { %749 = vsyncpa [#allocation9 + $0x1], 1 }
 0x1ec   :  { %750 = vsyncpa [#allocation4], 1 }
 0x1ed   :  { %752 = vsyncpa [#allocation4 + $0x1], 1 }

</bundles_post_ra>
